<compile_context>
chip_gen: v7x
topology: tpu7x:2x2x1
jax: 0.10.0
libtpu: 0.0.40
codegen_flags: <defaults>
</compile_context>

<pallas_src>
import functools

import jax
import jax.numpy as jnp
from jax.experimental import pallas as pl
from jax.experimental.pallas import tpu as pltpu


def _round_up(n, m):
    return ((n + m - 1) // m) * m


def actor_critic_kernel(x_ref, w1_ref, b1_ref, w2_ref, b2_ref,
                        logits_ref, value_ref, *, action_dim):
    # Fused hidden layer: lanes [0:H) actor hidden, [H:2H) critic hidden.
    h = jnp.dot(x_ref[...], w1_ref[...], preferred_element_type=jnp.float32) + b1_ref[...]
    h = jnp.maximum(h, 0.0)
    # Block-diagonal second layer -> small (TB, 8) slab; store only real lanes.
    slab = jnp.dot(h, w2_ref[...], preferred_element_type=jnp.float32) + b2_ref[...]
    logits_ref[...] = slab[:, :action_dim].astype(logits_ref.dtype)
    value_ref[...] = slab[:, action_dim:action_dim + 1].astype(value_ref.dtype)


def prepare_params(params):
    """One-time fusion of per-head weights into the kernel layout (cache the result)."""
    (w1a, b1a, w2a, b2a, w1c, b1c, w2c, b2c) = params
    state_dim, H = w1a.shape
    action_dim = w2a.shape[1]
    H2 = 2 * H
    out_pad = _round_up(action_dim + 1, 8)  # 5 -> 8; kernel slices the real lanes

    w1 = jnp.concatenate([w1a, w1c], axis=1)          # (state_dim, 2H)
    b1 = jnp.concatenate([b1a, b1c], axis=1)          # (1, 2H)
    w2 = jnp.zeros((H2, out_pad), jnp.float32)        # block-diagonal packing
    w2 = w2.at[:H, :action_dim].set(w2a)
    w2 = w2.at[H:, action_dim:action_dim + 1].set(w2c)
    b2 = jnp.zeros((1, out_pad), jnp.float32)
    b2 = b2.at[:, :action_dim].set(b2a)
    b2 = b2.at[:, action_dim:action_dim + 1].set(b2c)

    return dict(w1=w1, b1=b1, w2=w2, b2=b2,
                state_dim=state_dim, hidden_dim=H,
                action_dim=action_dim, out_pad=out_pad)


def actor_critic_forward(x, fused, *, batch_tile=2048, vmem_limit_bytes=None):
    """x: (B, state_dim) float32. Returns (logits (B, action_dim), value (B, 1))."""
    B, state_dim = x.shape
    assert state_dim == fused["state_dim"]
    H2 = 2 * fused["hidden_dim"]
    action_dim = fused["action_dim"]
    out_pad = fused["out_pad"]

    # ---- batch tiling: f32 sublane multiple of 8, ragged last block masked by Pallas ----
    TB = min(batch_tile, _round_up(B, 8))
    # Prefer >=2 grid steps for mid/large batches so both v7x TCs are used.
    if B >= 256 and pl.cdiv(B, TB) < 2:
        TB = _round_up((B + 1) // 2, 8)
    grid = (pl.cdiv(B, TB),)

    const = lambda shape: pl.BlockSpec(shape, lambda i: (0,) * len(shape))

    cp_kwargs = dict(dimension_semantics=("parallel",))
    if vmem_limit_bytes is not None:
        cp_kwargs["vmem_limit_bytes"] = vmem_limit_bytes

    logits, value = pl.pallas_call(
        functools.partial(actor_critic_kernel, action_dim=action_dim),
        out_shape=(
            jax.ShapeDtypeStruct((B, action_dim), jnp.float32),
            jax.ShapeDtypeStruct((B, 1), jnp.float32),
        ),
        grid=grid,
        in_specs=[
            pl.BlockSpec((TB, state_dim), lambda i: (i, 0)),  # batch-tiled activations
            const((state_dim, H2)), const((1, H2)),           # fused layer-1 (constant idx map)
            const((H2, out_pad)), const((1, out_pad)),        # fused layer-2 (constant idx map)
        ],
        out_specs=(
            pl.BlockSpec((TB, action_dim), lambda i: (i, 0)),
            pl.BlockSpec((TB, 1), lambda i: (i, 0)),
        ),
        compiler_params=pltpu.CompilerParams(**cp_kwargs),
    )(x, fused["w1"], fused["b1"], fused["w2"], fused["b2"])

    return logits, value


def init_params(key, state_dim, action_dim, hidden_dim=64):
    """Deterministic init mimicking PyTorch Linear default U(-1/sqrt(fan_in), 1/sqrt(fan_in))."""
    def linear(key, fan_in, fan_out):
        kw, kb = jax.random.split(key)
        bound = 1.0 / jnp.sqrt(jnp.float32(fan_in))
        w = jax.random.uniform(kw, (fan_in, fan_out), jnp.float32, -bound, bound)  # (in, out)
        b = jax.random.uniform(kb, (1, fan_out), jnp.float32, -bound, bound)
        return w, b

    k1, k2, k3, k4 = jax.random.split(key, 4)
    w1a, b1a = linear(k1, state_dim, hidden_dim)
    w2a, b2a = linear(k2, hidden_dim, action_dim)
    w1c, b1c = linear(k3, state_dim, hidden_dim)
    w2c, b2c = linear(k4, hidden_dim, 1)
    return (w1a, b1a, w2a, b2a, w1c, b1c, w2c, b2c)


def reference_forward(x, params):
    (w1a, b1a, w2a, b2a, w1c, b1c, w2c, b2c) = params
    logits = jnp.maximum(x @ w1a + b1a, 0.0) @ w2a + b2a
    value = jnp.maximum(x @ w1c + b1c, 0.0) @ w2c + b2c
    return logits, value


if __name__ == "__main__":
    # state_dim = 2 + 4 * num_enemies with num_enemies = 3 -> 14
    num_enemies = 3
    state_dim = 2 + 4 * num_enemies
    action_dim = 4
    hidden_dim = 64
    batch = 2

    key = jax.random.PRNGKey(0)
    kx, kp = jax.random.split(key)
    x = jax.random.normal(kx, (batch, state_dim), jnp.float32)
    params = init_params(kp, state_dim, action_dim, hidden_dim)
    fused = prepare_params(params)  # hoisted weight fusion (do once, reuse per step)

    logits, value = actor_critic_forward(x, fused)
    jax.block_until_ready((logits, value))

    ref_logits, ref_value = reference_forward(x, params)
    assert logits.shape == (batch, action_dim)
    assert value.shape == (batch, 1)
    assert jnp.allclose(logits, ref_logits, atol=1e-5, rtol=1e-5)
    assert jnp.allclose(value, ref_value, atol=1e-5, rtol=1e-5)

    # sanity: larger non-multiple-of-tile batch -> multi-step grid + ragged last block
    xb = jax.random.normal(kx, (300, state_dim), jnp.float32)
    lb, vb = actor_critic_forward(xb, fused)
    jax.block_until_ready((lb, vb))
    rlb, rvb = reference_forward(xb, params)
    assert lb.shape == (300, action_dim) and vb.shape == (300, 1)
    assert jnp.allclose(lb, rlb, atol=1e-5, rtol=1e-5)
    assert jnp.allclose(vb, rvb, atol=1e-5, rtol=1e-5)

    print("KERNEL_OK")
</pallas_src>

<mosaic_0001>
module attributes {stable_mosaic.version = 11 : i64} {
  func.func @actor_critic_kernel(%arg0: i32, %arg1: memref<8x14xf32, #tpu.memory_space<vmem>>, %arg2: memref<14x128xf32, #tpu.memory_space<vmem>>, %arg3: memref<1x128xf32, #tpu.memory_space<vmem>>, %arg4: memref<128x8xf32, #tpu.memory_space<vmem>>, %arg5: memref<1x8xf32, #tpu.memory_space<vmem>>, %arg6: memref<8x4xf32, #tpu.memory_space<vmem>>, %arg7: memref<8x1xf32, #tpu.memory_space<vmem>>) attributes {dimension_semantics = [#tpu.dimension_semantics<parallel>], iteration_bounds = array<i64: 1>, scalar_prefetch = 0 : i64, scratch_operands = 0 : i64, tpu.core_type = #tpu.core_type<tc>, window_params = [{transform_indices = @transform_0, window_bounds = array<i64: 8, 14>}, {pipeline_mode = #tpu.pipeline_mode<synchronous>, transform_indices = @transform_1, window_bounds = array<i64: 14, 128>}, {pipeline_mode = #tpu.pipeline_mode<synchronous>, transform_indices = @transform_2, window_bounds = array<i64: 1, 128>}, {pipeline_mode = #tpu.pipeline_mode<synchronous>, transform_indices = @transform_3, window_bounds = array<i64: 128, 8>}, {pipeline_mode = #tpu.pipeline_mode<synchronous>, transform_indices = @transform_4, window_bounds = array<i64: 1, 8>}, {transform_indices = @transform_5, window_bounds = array<i64: 8, 4>}, {transform_indices = @transform_6, window_bounds = array<i64: 8, 1>}]} {
    %c0 = arith.constant 0 : index
    %c0_0 = arith.constant 0 : index
    %0 = vector.load %arg1[%c0, %c0_0] : memref<8x14xf32, #tpu.memory_space<vmem>>, vector<8x14xf32>
    %c0_1 = arith.constant 0 : index
    %c0_2 = arith.constant 0 : index
    %1 = vector.load %arg2[%c0_1, %c0_2] : memref<14x128xf32, #tpu.memory_space<vmem>>, vector<14x128xf32>
    %cst = arith.constant dense<0.000000e+00> : vector<8x128xf32>
    %2 = tpu.matmul %0, %1, %cst {dimension_numbers = #tpu.dot_dimension_numbers<[1], [0], [0], [1], [0, 0, 1, 1], [], []>} : vector<8x14xf32>, vector<14x128xf32>, vector<8x128xf32> -> vector<8x128xf32>
    %c0_3 = arith.constant 0 : index
    %c0_4 = arith.constant 0 : index
    %3 = vector.load %arg3[%c0_3, %c0_4] : memref<1x128xf32, #tpu.memory_space<vmem>>, vector<1x128xf32>
    %4 = vector.broadcast %3 : vector<1x128xf32> to vector<8x128xf32>
    %5 = arith.addf %2, %4 : vector<8x128xf32>
    %cst_5 = arith.constant 0.000000e+00 : f32
    %6 = vector.broadcast %cst_5 : f32 to vector<8x128xf32>
    %7 = arith.maximumf %5, %6 : vector<8x128xf32>
    %c0_6 = arith.constant 0 : index
    %c0_7 = arith.constant 0 : index
    %8 = vector.load %arg4[%c0_6, %c0_7] : memref<128x8xf32, #tpu.memory_space<vmem>>, vector<128x8xf32>
    %cst_8 = arith.constant dense<0.000000e+00> : vector<8x8xf32>
    %9 = tpu.matmul %7, %8, %cst_8 {dimension_numbers = #tpu.dot_dimension_numbers<[1], [0], [0], [1], [0, 0, 1, 1], [], []>} : vector<8x128xf32>, vector<128x8xf32>, vector<8x8xf32> -> vector<8x8xf32>
    %c0_9 = arith.constant 0 : index
    %c0_10 = arith.constant 0 : index
    %10 = vector.load %arg5[%c0_9, %c0_10] : memref<1x8xf32, #tpu.memory_space<vmem>>, vector<1x8xf32>
    %11 = vector.broadcast %10 : vector<1x8xf32> to vector<8x8xf32>
    %12 = arith.addf %9, %11 : vector<8x8xf32>
    %13 = vector.extract_strided_slice %12 {offsets = [0, 0], sizes = [8, 4], strides = [1, 1]} : vector<8x8xf32> to vector<8x4xf32>
    %c0_11 = arith.constant 0 : index
    %c0_12 = arith.constant 0 : index
    %14 = vector.load %arg6[%c0_11, %c0_12] : memref<8x4xf32, #tpu.memory_space<vmem>>, vector<8x4xf32>
    tpu.vector_store %arg6[%c0_11, %c0_12], %13 {strides = array<i32>} : memref<8x4xf32, #tpu.memory_space<vmem>>, vector<8x4xf32>,
    %15 = vector.extract_strided_slice %12 {offsets = [0, 4], sizes = [8, 1], strides = [1, 1]} : vector<8x8xf32> to vector<8x1xf32>
    %c0_13 = arith.constant 0 : index
    %c0_14 = arith.constant 0 : index
    %16 = vector.load %arg7[%c0_13, %c0_14] : memref<8x1xf32, #tpu.memory_space<vmem>>, vector<8x1xf32>
    tpu.vector_store %arg7[%c0_13, %c0_14], %15 {strides = array<i32>} : memref<8x1xf32, #tpu.memory_space<vmem>>, vector<8x1xf32>,
    return
  }
  func.func @transform_0(%arg0: i32) -> (i32, i32) {
    %c0_i32 = arith.constant 0 : i32
    %c0_i32_0 = arith.constant 0 : i32
    return %arg0, %c0_i32 : i32, i32
  }
  func.func @transform_1(%arg0: i32) -> (i32, i32) {
    %c0_i32 = arith.constant 0 : i32
    %c0_i32_0 = arith.constant 0 : i32
    %c0_i32_1 = arith.constant 0 : i32
    return %c0_i32, %c0_i32_0 : i32, i32
  }
  func.func @transform_2(%arg0: i32) -> (i32, i32) {
    %c0_i32 = arith.constant 0 : i32
    %c0_i32_0 = arith.constant 0 : i32
    %c0_i32_1 = arith.constant 0 : i32
    return %c0_i32, %c0_i32_0 : i32, i32
  }
  func.func @transform_3(%arg0: i32) -> (i32, i32) {
    %c0_i32 = arith.constant 0 : i32
    %c0_i32_0 = arith.constant 0 : i32
    %c0_i32_1 = arith.constant 0 : i32
    return %c0_i32, %c0_i32_0 : i32, i32
  }
  func.func @transform_4(%arg0: i32) -> (i32, i32) {
    %c0_i32 = arith.constant 0 : i32
    %c0_i32_0 = arith.constant 0 : i32
    %c0_i32_1 = arith.constant 0 : i32
    return %c0_i32, %c0_i32_0 : i32, i32
  }
  func.func @transform_5(%arg0: i32) -> (i32, i32) {
    %c0_i32 = arith.constant 0 : i32
    %c0_i32_0 = arith.constant 0 : i32
    return %arg0, %c0_i32 : i32, i32
  }
  func.func @transform_6(%arg0: i32) -> (i32, i32) {
    %c0_i32 = arith.constant 0 : i32
    %c0_i32_0 = arith.constant 0 : i32
    return %arg0, %c0_i32 : i32, i32
  }
}

</mosaic_0001>

<bundles_post_ra>
// kernel: tpu_custom_call.1
= control target key start
LH: loop header
LB: loop body
LE: loop exit
PB: predicated region body
PF: predicated region fallthrough
CT: control target
= control target key end

     0   :  { %12 = vsyncpa [#allocation3], 0  ;;  %v394_v2 = vmov 0.0|0.0   ;;  %vm37_vm0 = vcmask 1045504   ;;  %vm395_vm1 = vmmov 1   ;;  %vm396_vm3 = vmmov 0   ;;  %s515_s0 = inlined_call_operand.vmem [shape: f32[2,14], index: 0, kind: input, shape index: {}]   ;;  %s516_s1 = inlined_call_operand.vmem [shape: f32[14,128], index: 1, kind: input, shape index: {}]   ;;  %s517_s2 = inlined_call_operand.vmem [shape: f32[1,128], index: 2, kind: input, shape index: {}]   ;;  %s518_s3 = inlined_call_operand.vmem [shape: f32[128,8], index: 3, kind: input, shape index: {}]   ;;  %s519_s4 = inlined_call_operand.vmem [shape: f32[1,8], index: 4, kind: input, shape index: {}]   ;;  %s520_s5 = inlined_call_operand.hbm [shape: f32[2,4], index: 5, kind: output, shape index: {0}]   ;;  %s521_s6 = inlined_call_operand.vmem [shape: f32[2,1], index: 6, kind: output, shape index: {1}]  }
   0x1   :  { %v24_v0 = vld [vmem:[%s516_s1] sm:$0xff]  ;;  %v25_v1 = vld [vmem:[%s516_s1 + $0x8] sm:$0x3f]  ;;  %334 = vmatprep.subr.bf16.mxu0 %v394_v2  ;;  %338 = vmatprep.subr.bf16.mxu1 %v394_v2  ;;  %vm336_vm2 = vmpackc.low %vm37_vm0, %vm395_vm1  ;;  %v397_v9 = vmov 0.0   ;;  %vm33_vm4 = vcmask 113664   ;;  %vm205_vm5 = vcmask 31744  }
   0x2   :  { %v335_v3 = vpack.c.bf16 %v25_v1, %v24_v0  ;;  %v112_v4 = vld [vmem:[%s518_s3] sm:$0xff]  ;;  %v113_v5 = vld [vmem:[%s518_s3 + $0x8] sm:$0xff]  ;;  %v114_v7 = vld [vmem:[%s518_s3 + $0x10] sm:$0xff]  ;;  %296 = vmatprep.mubr.msk.f32.mxu0 %vm396_vm3, %v397_v9  ;;  %331 = vmatprep.mubr.msk.f32.mxu1 %vm396_vm3, %v397_v9  ;;  %vm211_vm6 = vcmask 7168  }
   0x3   :  { %v339_v6 = vpack.c.bf16 %v113_v5, %v112_v4  ;;  %v115_v8 = vld [vmem:[%s518_s3 + $0x18] sm:$0xff]  ;;  %v23_v10 = vld [vmem:[%s515_s0] sm:$0xff]  ;;  %v117_v13 = vld [vmem:[%s518_s3 + $0x28] sm:$0xff] }
   0x4   :  { %337 = vmatpush3.bf16.msk.msra.mxu0 %vm336_vm2, %v335_v3  ;;  %v342_v11 = vpack.c.bf16 %v115_v8, %v114_v7  ;;  %v116_v12 = vld [vmem:[%s518_s3 + $0x20] sm:$0xff]  ;;  %v118_v15 = vld [vmem:[%s518_s3 + $0x30] sm:$0xff]  ;;  %v119_v16 = vld [vmem:[%s518_s3 + $0x38] sm:$0xff] }
   0x5   :  { %340 = vmatpush3.bf16.msra.mxu1 %v339_v6  ;;  %v345_v14 = vpack.c.bf16 %v117_v13, %v116_v12  ;;  %v348_v17 = vpack.c.bf16 %v119_v16, %v118_v15  ;;  %v120_v18 = vld [vmem:[%s518_s3 + $0x40] sm:$0xff]  ;;  %v121_v19 = vld [vmem:[%s518_s3 + $0x48] sm:$0xff]  ;;  %v122_v21 = vld [vmem:[%s518_s3 + $0x50] sm:$0xff] }
   0x6   :  { %341 = vmatprep.subr.bf16.mxu1 %v394_v2  ;;  %v351_v20 = vpack.c.bf16 %v121_v19, %v120_v18  ;;  %v123_v22 = vld [vmem:[%s518_s3 + $0x58] sm:$0xff]  ;;  %v124_v24 = vld [vmem:[%s518_s3 + $0x60] sm:$0xff]  ;;  %v125_v25 = vld [vmem:[%s518_s3 + $0x68] sm:$0xff] }
   0x7   :  { %297 = vmatmul.mubr.msk.f32.vlgmr.msra.gmra.mrb[0].mxu0 %vm33_vm4, %v23_v10  ;;  %v354_v23 = vpack.c.bf16 %v123_v22, %v122_v21  ;;  %v357_v26 = vpack.c.bf16 %v125_v25, %v124_v24  ;;  %v126_v27 = vld [vmem:[%s518_s3 + $0x70] sm:$0xff]  ;;  %v127_v28 = vld [vmem:[%s518_s3 + $0x78] sm:$0xff]  ;;  %v268_v30 = vld [vmem:[%s517_s2] ss:$0 sm:$0xff]  ;;  %s398_s3 = smov 124  }
   0x8   :  { %v360_v29 = vpack.c.bf16 %v127_v28, %v126_v27  ;;  %v271_v35 = vld [vmem:[%s519_s4] ss:$0 sm:$0xff] }
   0x9   :  { %343 = vmatpush3.bf16.msra.mxu1 %v342_v11 }
   0xa   :  { %344 = vmatprep.subr.bf16.mxu1 %v394_v2 }
   0xd   :  { %346 = vmatpush3.bf16.msra.mxu1 %v345_v14 }
   0xe   :  { %347 = vmatprep.subr.bf16.mxu1 %v394_v2 }
  0x11   :  { %349 = vmatpush3.bf16.msra.mxu1 %v348_v17 }
  0x12   :  { %350 = vmatprep.subr.bf16.mxu1 %v394_v2 }
  0x15   :  { %352 = vmatpush3.bf16.msra.mxu1 %v351_v20 }
  0x16   :  { %353 = vmatprep.subr.bf16.mxu1 %v394_v2 }
  0x19   :  { %355 = vmatpush3.bf16.msra.mxu1 %v354_v23 }
  0x1a   :  { %356 = vmatprep.subr.bf16.mxu1 %v394_v2 }
  0x1d   :  { %358 = vmatpush3.bf16.msra.mxu1 %v357_v26 }
  0x1e   :  { %359 = vmatprep.subr.bf16.mxu1 %v394_v2 }
  0x21   :  { %361 = vmatpush3.bf16.msra.mxu1 %v360_v29 }
  0xda   :  { %v107_v31 = vpop.f32.mrb[0].mxu0 }
  0xdb   :  { %v108_v32 = vadd.f32 %v268_v30, %v107_v31  ;;  %v298_v33 = vpop.f32.mrb[1].mxu0 }
  0xdd   :  { %v111_v34 = vmax.f32 %v108_v32, 0.0 }
  0xdf   :  { %332 = vmatmul.mubr.f32.vlgmr.msra.gmra.mrb[0].mxu1 %v111_v34 }
 0x1b2   :  { %v201_v36 = vpop.f32.mrb[0].mxu1 }
 0x1b3   :  { %v202_v37 = vadd.f32 %v271_v35, %v201_v36  ;;  %v333_v38 = vpop.f32.mrb[1].mxu1 }
 0x1b5   :  { %206 = vst.msk [vmem:[#allocation2] sm:$0xff] %vm205_vm5, %v202_v37  ;;  %208 = vrot.lane.b32.xlu0 %v202_v37, %s398_s3 }
 0x227   :  { %v209_v39 = vpop.permute.xlu0 %208 }
 0x228   :  { %212 = vst.msk [vmem:[#allocation4] sm:$0xff] %vm211_vm6, %v209_v39 }
 0x229   :  { %217 = vsyncadd [#allocation3], 96  ;;  %s399_s2 = smov [#allocation2]  }
 0x22a   :  { %s218_s12 = sshll.u32 %s399_s2, 4  ;;  %s219_s12 = int_to_ptr.vmem [resolvable:$true] %s218_s12 }
 0x22b   :  { %s370_s4 = scalar_lea.vmem %s219_s12, 32  ;;  %s374_s15 = scalar_lea.vmem %s219_s12, 128 }
 0x22c   :  { %p371_p0 = scmp.ne.s32.totalorder %s219_s12, %s370_s4  ;;  %p375_p1 = scmp.lt.s32.totalorder %s219_s12, %s219_s12 }
 0x22d   :  { %p376_p2 = scmp.lt.s32.totalorder %s374_s15, %s370_s4 }
 0x22f   :  { %v242_v40 = vld [vmem:[#allocation4] sm:$0x3]  ;;  %p377_p3 = por %p376_p2, %p375_p1 }
 0x230   :  { %243 = vst [vmem:[%s521_s6] sm:$0x3] %v242_v40 }
 0x231   :  { %p378_p4 = pnand %p377_p3, %p371_p0 }
 0x233   :  { %381 = shalt.err (!%p378_p4)
}
 0x234   :  { %s382_s17 = scalar_lea.hbm %s520_s5, 32 }
 0x235   :  { %p383_p5 = scmp.ne.s32.totalorder %s520_s5, %s382_s17  ;;  %p386_p6 = scmp.lt.u32.totalorder %s382_s17, %s520_s5 }
 0x237   :  { %p388_p7 = pnand %p386_p6, %p383_p5 }
 0x239   :  { %391 = shalt.err (!%p388_p7)
}
 0x23a   :  { %s400_s6 = smov 32   ;;  %s401_s22 = smov 2  }
 0x23b   :  { %224 = dma.vmem_to_hbm [thread:$0]  %s219_s12, 32, %s520_s5, [#allocation3], %s400_s6, %s400_s6, %s401_s22  }
 0x23c   :  { %392 = dma.done.wait [#allocation3], 128  }
 0x23d   :  { %393 = vsyncadd [#allocation3], 4294967168 }
 0x23e   :  { %263 = vsyncpa [#allocation3], 1 }

</bundles_post_ra>
